<compile_context>
chip_gen: v7x
topology: tpu7x:2x2x1
jax: 0.10.0
libtpu: 0.0.40
codegen_flags: <defaults>
</compile_context>

<pallas_src>
import functools

import jax
import jax.numpy as jnp
from jax.experimental import pallas as pl
from jax.experimental.pallas import tpu as pltpu


def _se_kernel(x_ref, w1t_ref, b1_ref, w2t_ref, b2_ref, o_ref, *, inv_hw):
    # x_ref/o_ref: (Bt, C, HW)   w1t_ref: (Cr, C)  b1_ref: (Cr, 1)
    #                            w2t_ref: (C, Cr)  b2_ref: (C, 1)
    bt, _, hw = x_ref.shape

    # Ones column for the MXU pooling matvec (hoisted out of the batch loop;
    # JAX does not CSE broadcasts).
    ones_col = jnp.ones((hw, 1), dtype=x_ref.dtype)
    b1 = b1_ref[...].astype(jnp.float32)
    b2 = b2_ref[...].astype(jnp.float32)

    for bi in range(bt):
        # Global average pool over the spatial (lane) axis as an MXU matvec:
        # (C, HW) @ (HW, 1) -> (C, 1), f32 accumulation, C stays on sublanes.
        pooled = jnp.dot(x_ref[bi], ones_col,
                         preferred_element_type=jnp.float32) * inv_hw

        # FC1 + ReLU in column form: (Cr, C) @ (C, 1) -> (Cr, 1).
        h = jnp.dot(w1t_ref[...], pooled.astype(w1t_ref.dtype),
                    preferred_element_type=jnp.float32)
        h = jnp.maximum(h + b1, 0.0)

        # FC2 + Sigmoid: (C, Cr) @ (Cr, 1) -> (C, 1) == per-channel scale.
        y = jnp.dot(w2t_ref[...], h.astype(w2t_ref.dtype),
                    preferred_element_type=jnp.float32)
        scale = jax.nn.sigmoid(y + b2)                       # (C, 1) f32

        # Rescale with a fresh VMEM read of x; native-dtype multiply,
        # (C, 1) scale broadcasts over the lanes.
        o_ref[bi] = x_ref[bi] * scale.astype(o_ref.dtype)


def _choose_batch_tile(B, slab_bytes):
    """Largest divisor of B whose per-step footprint (2x(in+out) buffers)
    stays under ~24 MiB, preferring steps that move at least ~2 MiB."""
    target = 2 << 20
    cap = 24 << 20
    best = 1
    for bt in range(1, B + 1):
        if B % bt:
            continue
        if 4 * bt * slab_bytes > cap:
            break
        best = bt
        if bt * slab_bytes >= target:
            break
    return best


def se_layer(x, w1, b1, w2, b2):
    """x: (B, C, H, W) NCHW; w1: (C, Cr); b1: (Cr,); w2: (Cr, C); b2: (C,).

    Returns x * sigmoid(relu(avgpool(x) @ w1 + b1) @ w2 + b2), matching the
    PyTorch SELayer forward.
    """
    B, C, H, W = x.shape
    Cr = w1.shape[1]
    HW = H * W

    # No spatial padding: HW stays ragged on the lane axis; the last block dim
    # equals the full array dim so the (8,128) rule does not apply.
    x_flat = x.reshape(B, C, HW)

    # Pre-transpose weights / reshape biases to column vectors so the whole
    # squeeze path stays in (C, 1) column form inside the kernel.
    w1t = w1.T                    # (Cr, C)
    w2t = w2.T                    # (C, Cr)
    b1c = b1.reshape(Cr, 1)
    b2c = b2.reshape(C, 1)

    itemsize = jnp.dtype(x.dtype).itemsize
    slab_bytes = C * HW * itemsize
    Bt = _choose_batch_tile(B, slab_bytes)
    grid = (B // Bt,)

    # Explicit VMEM budget: double-buffered in+out slabs plus resident weights.
    weight_bytes = (2 * Cr * C + Cr + C) * jnp.dtype(w1.dtype).itemsize
    step_bytes = 4 * Bt * slab_bytes + 2 * weight_bytes
    vmem_limit = int(min(64 << 20,
                         max(32 << 20, int(1.25 * step_bytes) + (1 << 20))))

    kernel = functools.partial(_se_kernel, inv_hw=1.0 / HW)

    out_flat = pl.pallas_call(
        kernel,
        out_shape=jax.ShapeDtypeStruct((B, C, HW), x.dtype),
        grid_spec=pltpu.PrefetchScalarGridSpec(
            num_scalar_prefetch=0,
            grid=grid,
            in_specs=[
                pl.BlockSpec((Bt, C, HW), lambda g: (g, 0, 0)),
                # Grid-invariant operands (constant index_map) stay resident
                # in VMEM; they are not re-DMAed per step.
                pl.BlockSpec((Cr, C), lambda g: (0, 0)),
                pl.BlockSpec((Cr, 1), lambda g: (0, 0)),
                pl.BlockSpec((C, Cr), lambda g: (0, 0)),
                pl.BlockSpec((C, 1), lambda g: (0, 0)),
            ],
            out_specs=pl.BlockSpec((Bt, C, HW), lambda g: (g, 0, 0)),
        ),
        compiler_params=pltpu.CompilerParams(
            dimension_semantics=("parallel",),
            vmem_limit_bytes=vmem_limit),
    )(x_flat, w1t, b1c, w2t, b2c)

    return out_flat.reshape(B, C, H, W)


def _reference(x, w1, b1, w2, b2):
    # Pure-JAX reference matching the PyTorch forward exactly.
    y = jnp.mean(x, axis=(2, 3))                      # (B, C)
    y = jnp.maximum(y @ w1 + b1, 0.0)                 # (B, Cr)
    y = jax.nn.sigmoid(y @ w2 + b2)                   # (B, C)
    return x * y[:, :, None, None]


if __name__ == "__main__":
    key = jax.random.PRNGKey(0)
    keys = jax.random.split(key, 10)

    # Shapes consistent with SELayer(channel=16, reduction=8).
    B, C, H, W = 2, 16, 16, 16
    reduction = 8
    Cr = C // reduction

    x = jax.random.normal(keys[0], (B, C, H, W), dtype=jnp.float32)
    # nn.Linear weights stored transposed as (in, out) for right-multiplication
    # in the reference; the wrapper re-transposes for the column-vector kernel.
    w1 = jax.random.normal(keys[1], (C, Cr), dtype=jnp.float32) * 0.1
    b1 = jax.random.normal(keys[2], (Cr,), dtype=jnp.float32) * 0.1
    w2 = jax.random.normal(keys[3], (Cr, C), dtype=jnp.float32) * 0.1
    b2 = jax.random.normal(keys[4], (C,), dtype=jnp.float32) * 0.1

    out = jax.block_until_ready(se_layer(x, w1, b1, w2, b2))
    ref = _reference(x, w1, b1, w2, b2)
    assert out.shape == (B, C, H, W)
    assert jnp.allclose(out, ref, atol=1e-5, rtol=1e-5), "mismatch vs reference"

    # Ragged spatial size (7x7 -> HW=49, not a multiple of 128) exercising the
    # no-pad path that real SE stages hit.
    B2, C2, H2, W2, red2 = 2, 16, 7, 7, 4
    Cr2 = C2 // red2
    x2 = jax.random.normal(keys[5], (B2, C2, H2, W2), dtype=jnp.float32)
    w1b = jax.random.normal(keys[6], (C2, Cr2), dtype=jnp.float32) * 0.1
    b1b = jax.random.normal(keys[7], (Cr2,), dtype=jnp.float32) * 0.1
    w2b = jax.random.normal(keys[8], (Cr2, C2), dtype=jnp.float32) * 0.1
    b2b = jax.random.normal(keys[9], (C2,), dtype=jnp.float32) * 0.1

    out2 = jax.block_until_ready(se_layer(x2, w1b, b1b, w2b, b2b))
    ref2 = _reference(x2, w1b, b1b, w2b, b2b)
    assert jnp.allclose(out2, ref2, atol=1e-5, rtol=1e-5), "ragged mismatch"

    print("KERNEL_OK")
</pallas_src>

<mosaic_0001>
module attributes {stable_mosaic.version = 11 : i64} {
  func.func @_se_kernel(%arg0: i32, %arg1: memref<2x16x256xf32, #tpu.memory_space<vmem>>, %arg2: memref<2x16xf32, #tpu.memory_space<vmem>>, %arg3: memref<2x1xf32, #tpu.memory_space<vmem>>, %arg4: memref<16x2xf32, #tpu.memory_space<vmem>>, %arg5: memref<16x1xf32, #tpu.memory_space<vmem>>, %arg6: memref<2x16x256xf32, #tpu.memory_space<vmem>>) attributes {dimension_semantics = [#tpu.dimension_semantics<parallel>], iteration_bounds = array<i64: 1>, scalar_prefetch = 0 : i64, scratch_operands = 0 : i64, tpu.core_type = #tpu.core_type<tc>, window_params = [{transform_indices = @transform_0, window_bounds = array<i64: 2, 16, 256>}, {pipeline_mode = #tpu.pipeline_mode<synchronous>, transform_indices = @transform_1, window_bounds = array<i64: 2, 16>}, {pipeline_mode = #tpu.pipeline_mode<synchronous>, transform_indices = @transform_2, window_bounds = array<i64: 2, 1>}, {pipeline_mode = #tpu.pipeline_mode<synchronous>, transform_indices = @transform_3, window_bounds = array<i64: 16, 2>}, {pipeline_mode = #tpu.pipeline_mode<synchronous>, transform_indices = @transform_4, window_bounds = array<i64: 16, 1>}, {transform_indices = @transform_5, window_bounds = array<i64: 2, 16, 256>}]} {
    %cst = arith.constant 1.000000e+00 : f32
    %0 = vector.broadcast %cst : f32 to vector<256x1xf32>
    %c0 = arith.constant 0 : index
    %c0_0 = arith.constant 0 : index
    %1 = vector.load %arg3[%c0, %c0_0] : memref<2x1xf32, #tpu.memory_space<vmem>>, vector<2x1xf32>
    %c0_1 = arith.constant 0 : index
    %c0_2 = arith.constant 0 : index
    %2 = vector.load %arg5[%c0_1, %c0_2] : memref<16x1xf32, #tpu.memory_space<vmem>>, vector<16x1xf32>
    %c0_3 = arith.constant 0 : index
    %c0_4 = arith.constant 0 : index
    %c0_5 = arith.constant 0 : index
    %3 = vector.load %arg1[%c0_3, %c0_4, %c0_5] : memref<2x16x256xf32, #tpu.memory_space<vmem>>, vector<1x16x256xf32>
    %4 = vector.shape_cast %3 : vector<1x16x256xf32> to vector<16x256xf32>
    %cst_6 = arith.constant dense<0.000000e+00> : vector<16x1xf32>
    %5 = tpu.matmul %4, %0, %cst_6 {dimension_numbers = #tpu.dot_dimension_numbers<[1], [0], [0], [1], [0, 0, 1, 1], [], []>} : vector<16x256xf32>, vector<256x1xf32>, vector<16x1xf32> -> vector<16x1xf32>
    %cst_7 = arith.constant 3.906250e-03 : f32
    %6 = vector.broadcast %cst_7 : f32 to vector<16x1xf32>
    %7 = arith.mulf %5, %6 : vector<16x1xf32>
    %c0_8 = arith.constant 0 : index
    %c0_9 = arith.constant 0 : index
    %8 = vector.load %arg2[%c0_8, %c0_9] : memref<2x16xf32, #tpu.memory_space<vmem>>, vector<2x16xf32>
    %cst_10 = arith.constant dense<0.000000e+00> : vector<2x1xf32>
    %9 = tpu.matmul %8, %7, %cst_10 {dimension_numbers = #tpu.dot_dimension_numbers<[1], [0], [0], [1], [0, 0, 1, 1], [], []>} : vector<2x16xf32>, vector<16x1xf32>, vector<2x1xf32> -> vector<2x1xf32>
    %10 = arith.addf %9, %1 : vector<2x1xf32>
    %cst_11 = arith.constant 0.000000e+00 : f32
    %11 = vector.broadcast %cst_11 : f32 to vector<2x1xf32>
    %12 = arith.maximumf %10, %11 : vector<2x1xf32>
    %c0_12 = arith.constant 0 : index
    %c0_13 = arith.constant 0 : index
    %13 = vector.load %arg4[%c0_12, %c0_13] : memref<16x2xf32, #tpu.memory_space<vmem>>, vector<16x2xf32>
    %cst_14 = arith.constant dense<0.000000e+00> : vector<16x1xf32>
    %14 = tpu.matmul %13, %12, %cst_14 {dimension_numbers = #tpu.dot_dimension_numbers<[1], [0], [0], [1], [0, 0, 1, 1], [], []>} : vector<16x2xf32>, vector<2x1xf32>, vector<16x1xf32> -> vector<16x1xf32>
    %15 = arith.addf %14, %2 : vector<16x1xf32>
    %16 = arith.negf %15 : vector<16x1xf32>
    %17 = math.exp %16 : vector<16x1xf32>
    %cst_15 = arith.constant 1.000000e+00 : f32
    %18 = vector.broadcast %cst_15 : f32 to vector<16x1xf32>
    %19 = arith.addf %18, %17 : vector<16x1xf32>
    %20 = arith.divf %18, %19 : vector<16x1xf32>
    %c0_16 = arith.constant 0 : index
    %c0_17 = arith.constant 0 : index
    %c0_18 = arith.constant 0 : index
    %21 = vector.load %arg1[%c0_16, %c0_17, %c0_18] : memref<2x16x256xf32, #tpu.memory_space<vmem>>, vector<1x16x256xf32>
    %22 = vector.shape_cast %21 : vector<1x16x256xf32> to vector<16x256xf32>
    %23 = vector.broadcast %20 : vector<16x1xf32> to vector<16x256xf32>
    %24 = arith.mulf %22, %23 : vector<16x256xf32>
    %c0_19 = arith.constant 0 : index
    %c0_20 = arith.constant 0 : index
    %c0_21 = arith.constant 0 : index
    %25 = vector.load %arg6[%c0_19, %c0_20, %c0_21] : memref<2x16x256xf32, #tpu.memory_space<vmem>>, vector<1x16x256xf32>
    %26 = vector.shape_cast %25 : vector<1x16x256xf32> to vector<16x256xf32>
    %27 = vector.shape_cast %24 : vector<16x256xf32> to vector<1x16x256xf32>
    tpu.vector_store %arg6[%c0_19, %c0_20, %c0_21], %27 {strides = array<i32>} : memref<2x16x256xf32, #tpu.memory_space<vmem>>, vector<1x16x256xf32>,
    %c1 = arith.constant 1 : index
    %c0_22 = arith.constant 0 : index
    %c0_23 = arith.constant 0 : index
    %28 = vector.load %arg1[%c1, %c0_22, %c0_23] : memref<2x16x256xf32, #tpu.memory_space<vmem>>, vector<1x16x256xf32>
    %29 = vector.shape_cast %28 : vector<1x16x256xf32> to vector<16x256xf32>
    %cst_24 = arith.constant dense<0.000000e+00> : vector<16x1xf32>
    %30 = tpu.matmul %29, %0, %cst_24 {dimension_numbers = #tpu.dot_dimension_numbers<[1], [0], [0], [1], [0, 0, 1, 1], [], []>} : vector<16x256xf32>, vector<256x1xf32>, vector<16x1xf32> -> vector<16x1xf32>
    %cst_25 = arith.constant 3.906250e-03 : f32
    %31 = vector.broadcast %cst_25 : f32 to vector<16x1xf32>
    %32 = arith.mulf %30, %31 : vector<16x1xf32>
    %c0_26 = arith.constant 0 : index
    %c0_27 = arith.constant 0 : index
    %33 = vector.load %arg2[%c0_26, %c0_27] : memref<2x16xf32, #tpu.memory_space<vmem>>, vector<2x16xf32>
    %cst_28 = arith.constant dense<0.000000e+00> : vector<2x1xf32>
    %34 = tpu.matmul %33, %32, %cst_28 {dimension_numbers = #tpu.dot_dimension_numbers<[1], [0], [0], [1], [0, 0, 1, 1], [], []>} : vector<2x16xf32>, vector<16x1xf32>, vector<2x1xf32> -> vector<2x1xf32>
    %35 = arith.addf %34, %1 : vector<2x1xf32>
    %cst_29 = arith.constant 0.000000e+00 : f32
    %36 = vector.broadcast %cst_29 : f32 to vector<2x1xf32>
    %37 = arith.maximumf %35, %36 : vector<2x1xf32>
    %c0_30 = arith.constant 0 : index
    %c0_31 = arith.constant 0 : index
    %38 = vector.load %arg4[%c0_30, %c0_31] : memref<16x2xf32, #tpu.memory_space<vmem>>, vector<16x2xf32>
    %cst_32 = arith.constant dense<0.000000e+00> : vector<16x1xf32>
    %39 = tpu.matmul %38, %37, %cst_32 {dimension_numbers = #tpu.dot_dimension_numbers<[1], [0], [0], [1], [0, 0, 1, 1], [], []>} : vector<16x2xf32>, vector<2x1xf32>, vector<16x1xf32> -> vector<16x1xf32>
    %40 = arith.addf %39, %2 : vector<16x1xf32>
    %41 = arith.negf %40 : vector<16x1xf32>
    %42 = math.exp %41 : vector<16x1xf32>
    %cst_33 = arith.constant 1.000000e+00 : f32
    %43 = vector.broadcast %cst_33 : f32 to vector<16x1xf32>
    %44 = arith.addf %43, %42 : vector<16x1xf32>
    %45 = arith.divf %43, %44 : vector<16x1xf32>
    %c1_34 = arith.constant 1 : index
    %c0_35 = arith.constant 0 : index
    %c0_36 = arith.constant 0 : index
    %46 = vector.load %arg1[%c1_34, %c0_35, %c0_36] : memref<2x16x256xf32, #tpu.memory_space<vmem>>, vector<1x16x256xf32>
    %47 = vector.shape_cast %46 : vector<1x16x256xf32> to vector<16x256xf32>
    %48 = vector.broadcast %45 : vector<16x1xf32> to vector<16x256xf32>
    %49 = arith.mulf %47, %48 : vector<16x256xf32>
    %c1_37 = arith.constant 1 : index
    %c0_38 = arith.constant 0 : index
    %c0_39 = arith.constant 0 : index
    %50 = vector.load %arg6[%c1_37, %c0_38, %c0_39] : memref<2x16x256xf32, #tpu.memory_space<vmem>>, vector<1x16x256xf32>
    %51 = vector.shape_cast %50 : vector<1x16x256xf32> to vector<16x256xf32>
    %52 = vector.shape_cast %49 : vector<16x256xf32> to vector<1x16x256xf32>
    tpu.vector_store %arg6[%c1_37, %c0_38, %c0_39], %52 {strides = array<i32>} : memref<2x16x256xf32, #tpu.memory_space<vmem>>, vector<1x16x256xf32>,
    return
  }
  func.func @transform_0(%arg0: i32) -> (i32, i32, i32) {
    %c0_i32 = arith.constant 0 : i32
    %c0_i32_0 = arith.constant 0 : i32
    %c0_i32_1 = arith.constant 0 : i32
    return %arg0, %c0_i32, %c0_i32_0 : i32, i32, i32
  }
  func.func @transform_1(%arg0: i32) -> (i32, i32) {
    %c0_i32 = arith.constant 0 : i32
    %c0_i32_0 = arith.constant 0 : i32
    %c0_i32_1 = arith.constant 0 : i32
    return %c0_i32, %c0_i32_0 : i32, i32
  }
  func.func @transform_2(%arg0: i32) -> (i32, i32) {
    %c0_i32 = arith.constant 0 : i32
    %c0_i32_0 = arith.constant 0 : i32
    %c0_i32_1 = arith.constant 0 : i32
    return %c0_i32, %c0_i32_0 : i32, i32
  }
  func.func @transform_3(%arg0: i32) -> (i32, i32) {
    %c0_i32 = arith.constant 0 : i32
    %c0_i32_0 = arith.constant 0 : i32
    %c0_i32_1 = arith.constant 0 : i32
    return %c0_i32, %c0_i32_0 : i32, i32
  }
  func.func @transform_4(%arg0: i32) -> (i32, i32) {
    %c0_i32 = arith.constant 0 : i32
    %c0_i32_0 = arith.constant 0 : i32
    %c0_i32_1 = arith.constant 0 : i32
    return %c0_i32, %c0_i32_0 : i32, i32
  }
  func.func @transform_5(%arg0: i32) -> (i32, i32, i32) {
    %c0_i32 = arith.constant 0 : i32
    %c0_i32_0 = arith.constant 0 : i32
    %c0_i32_1 = arith.constant 0 : i32
    return %arg0, %c0_i32, %c0_i32_0 : i32, i32, i32
  }
}

</mosaic_0001>

<bundles_post_ra>
// kernel: tpu_custom_call.1
= control target key start
LH: loop header
LB: loop body
LE: loop exit
PB: predicated region body
PF: predicated region fallthrough
CT: control target
= control target key end

     0   :  { %10 = vsyncpa [#allocation3], 0  ;;  %s1017_s0 = inlined_call_operand.hbm [shape: f32[2,16,256], index: 0, kind: input, shape index: {}]   ;;  %s1018_s1 = inlined_call_operand.vmem [shape: f32[2,16], index: 1, kind: input, shape index: {}]   ;;  %s1019_s2 = inlined_call_operand.vmem [shape: f32[2,1], index: 2, kind: input, shape index: {}]   ;;  %s1020_s3 = inlined_call_operand.vmem [shape: f32[16,2], index: 3, kind: input, shape index: {}]   ;;  %s1021_s4 = inlined_call_operand.vmem [shape: f32[16,1], index: 4, kind: input, shape index: {}]   ;;  %s1022_s5 = inlined_call_operand.hbm [shape: f32[2,16,256], index: 5, kind: output, shape index: {}]  }
   0x1   :  { %11 = vsyncpa [#allocation4], 0  ;;  %s841_s18 = smov [#allocation2]   ;;  %s793_s22 = scalar_lea.hbm %s1017_s0, 1024 }
   0x2   :  { %s17_s19 = sshll.u32 %s841_s18, 4  ;;  %p794_p0 = scmp.ne.s32.totalorder %s1017_s0, %s793_s22  ;;  %s18_s19 = int_to_ptr.vmem [resolvable:$true] %s17_s19 }
   0x3   :  { %p797_p1 = scmp.lt.u32.totalorder %s793_s22, %s1017_s0 }
   0x5   :  { %p799_p2 = pnand %p797_p1, %p794_p0 }
   0x7   :  { %802 = shalt.err (!%p799_p2)
}
   0x8   :  { %s803_s27 = scalar_lea.vmem %s18_s19, 1024  ;;  %p808_p4 = scmp.lt.s32.totalorder %s18_s19, %s18_s19 }
   0x9   :  { %p804_p3 = scmp.ne.s32.totalorder %s18_s19, %s803_s27  ;;  %p809_p5 = scmp.lt.s32.totalorder %s803_s27, %s803_s27 }
   0xb   :  { %p810_p6 = por %p809_p5, %p808_p4 }
   0xd   :  { %p811_p7 = pnand %p810_p6, %p804_p3 }
   0xf   :  { %814 = shalt.err (!%p811_p7)
}
  0x10   :  { %s842_s28 = smov 256   ;;  %s843_s29 = smov 16  }
  0x11   :  { %23 = dma.hbm_to_vmem [thread:$0]  %s1017_s0, 1024, %s18_s19, [#allocation3], %s842_s28, %s842_s28, %s843_s29  }
  0x12   :  { %837 = dma.done.wait [#allocation3], 1024  }
  0x13   :  { %838 = vsyncadd [#allocation3], 4294966272  ;;  %v844_v0 = vmov 1.0|1.0   ;;  %v900_v1 = vld [vmem:[#allocation2 + $0x8] sm:$0xff]  ;;  %v914_v2 = vld [vmem:[#allocation2] sm:$0xff] }
  0x14   :  { %728 = vmatprep.subr.bf16.mxu0 %v844_v0  ;;  %106 = vmatprep.mubr.f32.mxu0 %v900_v1  ;;  %v916_v3 = vld [vmem:[#allocation2 + $0x18] sm:$0xff]  ;;  %v920_v4 = vld [vmem:[#allocation2 + $0x10] sm:$0xff]  ;;  %v845_v5 = vmov 0.0|0.0   ;;  %vm846_vm0 = vmmov 0   ;;  %v847_v6 = vmov 0.0   ;;  %vm120_vm1 = vcmask 130048  }
  0x15   :  { %729 = vmatpush3.bf16.msra.mxu0 %v844_v0  ;;  %744 = vmatprep.subr.bf16.mxu1 %v845_v5  ;;  %v119_v16 = vld [vmem:[%s1018_s1] sm:$0x3]  ;;  %vm197_vm2 = vcmask 15360   ;;  %vm204_vm3 = vcmask 1041408   ;;  %v943_v23 = vld [vmem:[%s1020_s3 + $0x8] sm:$0xff]  ;;  %v970_v26 = vld [vmem:[#allocation2 + $0x38] sm:$0xff] }
  0x16   :  { %730 = vmatprep.subr.bf16.mxu0 %v844_v0  ;;  %708 = vmatprep.mubr.msk.f32.mxu1 %vm846_vm0, %v847_v6  ;;  %v930_v17 = vld [vmem:[%s1020_s3] sm:$0xff]  ;;  %v946_v24 = vld [vmem:[#allocation2 + $0x28] sm:$0xff]  ;;  %v974_v27 = vld [vmem:[#allocation2 + $0x30] sm:$0xff]  ;;  %v848_v28 = vmov 0  }
  0x17   :  { %v937_v18 = vld [vmem:[%s1019_s2] sm:$0x3]  ;;  %775 = vset.pattern.permute.xlu0 %v848_v28  ;;  %776 = vset.pattern.permute.xlu1 %v848_v28  ;;  %v37_v29 = vld [vmem:[%s1021_s4 + $0x8] sm:$0xff] }
  0x18   :  { %v968_v25 = vld [vmem:[#allocation2 + $0x20] sm:$0xff] }
  0x19   :  { %731 = vmatpush3.bf16.msra.mxu0 %v844_v0  ;;  %v36_v30 = vld [vmem:[%s1021_s4] sm:$0xff] }
  0x1a   :  { %732 = vmatprep.subr.bf16.mxu0 %v844_v0  ;;  %v395_v52 = vld [vmem:[%s1018_s1] sm:$0x3]  ;;  %s849_s1 = smov [#allocation5]  }
  0x1b   :  { %s592_s17 = sshll.u32 %s849_s1, 4  ;;  %s593_s17 = int_to_ptr.vmem [resolvable:$true] %s592_s17 }
  0x1c   :  { %s815_s18 = scalar_lea.vmem %s593_s17, 1024  ;;  %p820_p9 = scmp.lt.s32.totalorder %s593_s17, %s593_s17 }
  0x1d   :  { %733 = vmatpush3.bf16.msra.mxu0 %v844_v0  ;;  %p816_p8 = scmp.ne.s32.totalorder %s593_s17, %s815_s18  ;;  %p821_p10 = scmp.lt.s32.totalorder %s815_s18, %s815_s18 }
  0x1e   :  { %734 = vmatprep.subr.bf16.mxu0 %v844_v0 }
  0x1f   :  { %p822_p11 = por %p821_p10, %p820_p9 }
  0x21   :  { %735 = vmatpush3.bf16.msra.mxu0 %v844_v0  ;;  %p823_p12 = pnand %p822_p11, %p816_p8 }
  0x22   :  { %736 = vmatprep.subr.bf16.mxu0 %v844_v0 }
  0x25   :  { %737 = vmatpush3.bf16.msra.mxu0 %v844_v0 }
  0x26   :  { %738 = vmatprep.subr.bf16.mxu0 %v844_v0 }
  0x29   :  { %739 = vmatpush3.bf16.msra.mxu0 %v844_v0 }
  0x2a   :  { %740 = vmatprep.subr.bf16.mxu0 %v844_v0 }
  0x2d   :  { %741 = vmatpush3.bf16.msra.mxu0 %v844_v0 }
  0x2e   :  { %742 = vmatprep.subr.bf16.mxu0 %v844_v0 }
  0x31   :  { %743 = vmatpush3.bf16.msra.mxu0 %v844_v0 }
  0x32   :  { %763 = vmatprep.subr.bf16.mxu0 %v845_v5 }
  0x34   :  { %107 = vmatmul.mubr.f32.vlgmr.msra.gmra.mrb[0].mxu0 %v914_v2 }
  0x35   :  { %111 = vmatprep.mubr.f32.mxu0 %v916_v3 }
  0x38   :  { %112 = vmatmul.mubr.f32.gmra.mrb[2].mxu0 %v920_v4 }
  0x39   :  { %720 = vmatprep.mubr.msk.f32.mxu0 %vm846_vm0, %v847_v6 }
 0x107   :  { %v648_v7 = vpop.f32.mrb[0].mxu0 }
 0x108   :  { %v649_v8 = vpop.f32.mrb[1].mxu0 }
 0x109   :  { %v650_v9 = vadd.f32 %v649_v8, %v648_v7 }
 0x10b   :  { %v651_v10 = vpop.f32.mrb[2].mxu0  ;;  %v117_v13 = vmul.f32 0.00390625, %v650_v9 }
 0x10c   :  { %v652_v11 = vpop.f32.mrb[3].mxu0 }
 0x10d   :  { %v653_v12 = vadd.f32 %v652_v11, %v651_v10 }
 0x10f   :  { %v118_v14 = vmul.f32 0.00390625, %v653_v12 }
 0x111   :  { %v745_v15 = vpack.c.bf16 %v118_v14, %v117_v13 }
 0x113   :  { %746 = vmatpush3.bf16.msra.mxu1 %v745_v15 }
 0x116   :  { %709 = vmatmul.mubr.msk.f32.vlgmr.msra.gmra.mrb[0].mxu1 %vm120_vm1, %v119_v16 }
 0x117   :  { %713 = vmatprep.mubr.msk.f32.mxu1 %vm197_vm2, %v930_v17 }
 0x1e9   :  { %v190_v19 = vpop.f32.mrb[0].mxu1 }
 0x1ea   :  { %v191_v20 = vadd.f32 %v190_v19, %v937_v18  ;;  %v710_v21 = vpop.f32.mrb[1].mxu1 }
 0x1ec   :  { %v194_v22 = vmax.f32 %v191_v20, 0.0 }
 0x1ee   :  { %711 = vmatprep.subr.msk.mxu1 %vm204_vm3, %v194_v22 }
 0x1ef   :  { %712 = vmatpush3.msk.msra.mxu1 %vm204_vm3, %v194_v22 }
 0x1f0   :  { %714 = vmatmul.mubr.msk.f32.vlgmr.msra.gmra.mrb[2].mxu1 %vm197_vm2, %v943_v23  ;;  %747 = vmatprep.subr.bf16.mxu1 %v844_v0 }
 0x1f1   :  { %748 = vmatpush3.bf16.msra.mxu1 %v844_v0  ;;  %382 = vmatprep.mubr.f32.mxu1 %v946_v24 }
 0x1f2   :  { %749 = vmatprep.subr.bf16.mxu1 %v844_v0 }
 0x1f5   :  { %750 = vmatpush3.bf16.msra.mxu1 %v844_v0 }
 0x1f6   :  { %751 = vmatprep.subr.bf16.mxu1 %v844_v0 }
 0x1f9   :  { %752 = vmatpush3.bf16.msra.mxu1 %v844_v0 }
 0x1fa   :  { %753 = vmatprep.subr.bf16.mxu1 %v844_v0 }
 0x1fd   :  { %754 = vmatpush3.bf16.msra.mxu1 %v844_v0 }
 0x1fe   :  { %755 = vmatprep.subr.bf16.mxu1 %v844_v0 }
 0x201   :  { %756 = vmatpush3.bf16.msra.mxu1 %v844_v0 }
 0x202   :  { %757 = vmatprep.subr.bf16.mxu1 %v844_v0 }
 0x205   :  { %758 = vmatpush3.bf16.msra.mxu1 %v844_v0 }
 0x206   :  { %759 = vmatprep.subr.bf16.mxu1 %v844_v0 }
 0x209   :  { %760 = vmatpush3.bf16.msra.mxu1 %v844_v0 }
 0x20a   :  { %761 = vmatprep.subr.bf16.mxu1 %v844_v0 }
 0x20d   :  { %762 = vmatpush3.bf16.msra.mxu1 %v844_v0 }
 0x210   :  { %383 = vmatmul.mubr.f32.vlgmr.msra.gmra.mrb[4].mxu1 %v968_v25 }
 0x211   :  { %387 = vmatprep.mubr.f32.mxu1 %v970_v26 }
 0x214   :  { %388 = vmatmul.mubr.f32.gmra.mrb[6].mxu1 %v974_v27 }
 0x2c3   :  { %v715_v31 = vpop.f32.mrb[2].mxu1 }
 0x2c4   :  { %v280_v32 = vadd.f32 %v715_v31, %v37_v29  ;;  %v274_v33 = vpop.f32.mrb[3].mxu1 }
 0x2c5   :  { %v275_v34 = vadd.f32 %v274_v33, %v36_v30 }
 0x2c6   :  { %v609_v35 = vmul.f32 -1.442695, %v280_v32 }
 0x2c7   :  { %v608_v36 = vmul.f32 -1.442695, %v275_v34 }
 0x2c8   :  { %777 = vpow2.f32 %v609_v35 }
 0x2c9   :  { %779 = vpow2.f32 %v608_v36 }
 0x2d2   :  { %v778_v37 = vpop.eup %777 }
 0x2d3   :  { %v780_v38 = vpop.eup %779  ;;  %v290_v40 = vadd.f32 1.0, %v778_v37 }
 0x2d4   :  { %v289_v39 = vadd.f32 1.0, %v780_v38 }
 0x2d6   :  { %781 = vrcp.f32 %v289_v39 }
 0x2d7   :  { %783 = vrcp.f32 %v290_v40 }
 0x2e0   :  { %v782_v41 = vpop.eup %781 }
 0x2e1   :  { %297 = vperm.xlu0 %775, %v782_v41   ;;  %v784_v43 = vpop.eup %783 }
 0x2e3   :  { %v692_v42 = vpop.f32.mrb[4].mxu1 }
 0x2e4   :  { %v693_v44 = vpop.f32.mrb[5].mxu1 }
 0x2e5   :  { %v694_v45 = vadd.f32 %v693_v44, %v692_v42  ;;  %302 = vperm.xlu0 %775, %v784_v43  }
 0x2e7   :  { %v695_v46 = vpop.f32.mrb[6].mxu1  ;;  %v393_v49 = vmul.f32 0.00390625, %v694_v45 }
 0x2e8   :  { %v696_v47 = vpop.f32.mrb[7].mxu1 }
 0x2e9   :  { %v697_v48 = vadd.f32 %v696_v47, %v695_v46 }
 0x2eb   :  { %v394_v50 = vmul.f32 0.00390625, %v697_v48 }
 0x2ed   :  { %v764_v51 = vpack.c.bf16 %v394_v50, %v393_v49 }
 0x2ef   :  { %765 = vmatpush3.bf16.msra.mxu0 %v764_v51 }
 0x2f2   :  { %721 = vmatmul.mubr.msk.f32.vlgmr.msra.gmra.mrb[4].mxu0 %vm120_vm1, %v395_v52 }
 0x2f3   :  { %725 = vmatprep.mubr.msk.f32.mxu0 %vm197_vm2, %v930_v17 }
 0x360   :  { %v298_v53 = vpop.permute.xlu0 %297 }
 0x361   :  { %v305_v54 = vmul.f32 %v298_v53, %v914_v2  ;;  %v306_v55 = vmul.f32 %v298_v53, %v900_v1 }
 0x363   :  { %309 = vst [vmem:[#allocation5] sm:$0xff] %v305_v54  ;;  %310 = vst [vmem:[#allocation5 + $0x8] sm:$0xff] %v306_v55 }
 0x364   :  { %v303_v56 = vpop.permute.xlu0 %302 }
 0x365   :  { %v307_v57 = vmul.f32 %v303_v56, %v920_v4  ;;  %v308_v58 = vmul.f32 %v303_v56, %v916_v3 }
 0x367   :  { %311 = vst [vmem:[#allocation5 + $0x10] sm:$0xff] %v307_v57  ;;  %312 = vst [vmem:[#allocation5 + $0x18] sm:$0xff] %v308_v58 }
 0x3c5   :  { %v465_v59 = vpop.f32.mrb[4].mxu0 }
 0x3c6   :  { %v466_v60 = vadd.f32 %v465_v59, %v937_v18  ;;  %v722_v61 = vpop.f32.mrb[5].mxu0 }
 0x3c8   :  { %v469_v62 = vmax.f32 %v466_v60, 0.0 }
 0x3ca   :  { %723 = vmatprep.subr.msk.mxu0 %vm204_vm3, %v469_v62 }
 0x3cb   :  { %724 = vmatpush3.msk.msra.mxu0 %vm204_vm3, %v469_v62 }
 0x3cc   :  { %726 = vmatmul.mubr.msk.f32.vlgmr.msra.gmra.mrb[6].mxu0 %vm197_vm2, %v943_v23 }
 0x49f   :  { %v727_v63 = vpop.f32.mrb[6].mxu0 }
 0x4a0   :  { %v553_v0 = vadd.f32 %v727_v63, %v37_v29  ;;  %v547_v1 = vpop.f32.mrb[7].mxu0 }
 0x4a1   :  { %v548_v2 = vadd.f32 %v547_v1, %v36_v30 }
 0x4a2   :  { %v615_v4 = vmul.f32 -1.442695, %v553_v0 }
 0x4a3   :  { %v614_v3 = vmul.f32 -1.442695, %v548_v2 }
 0x4a4   :  { %785 = vpow2.f32 %v615_v4 }
 0x4a5   :  { %787 = vpow2.f32 %v614_v3 }
 0x4ae   :  { %v786_v5 = vpop.eup %785 }
 0x4af   :  { %v788_v6 = vpop.eup %787  ;;  %v563_v8 = vadd.f32 1.0, %v786_v5 }
 0x4b0   :  { %v562_v7 = vadd.f32 1.0, %v788_v6 }
 0x4b2   :  { %789 = vrcp.f32 %v562_v7 }
 0x4b3   :  { %791 = vrcp.f32 %v563_v8 }
 0x4bc   :  { %v790_v9 = vpop.eup %789 }
 0x4bd   :  { %570 = vperm.xlu1 %776, %v790_v9   ;;  %v792_v10 = vpop.eup %791 }
 0x4c1   :  { %575 = vperm.xlu1 %776, %v792_v10  }
 0x53c   :  { %v571_v11 = vpop.permute.xlu1 %570 }
 0x53d   :  { %v578_v12 = vmul.f32 %v571_v11, %v968_v25  ;;  %v579_v13 = vmul.f32 %v571_v11, %v946_v24 }
 0x53f   :  { %583 = vst [vmem:[#allocation5 + $0x20] sm:$0xff] %v578_v12  ;;  %584 = vst [vmem:[#allocation5 + $0x28] sm:$0xff] %v579_v13 }
 0x540   :  { %v576_v14 = vpop.permute.xlu1 %575 }
 0x541   :  { %v580_v15 = vmul.f32 %v576_v14, %v974_v27  ;;  %v581_v16 = vmul.f32 %v576_v14, %v970_v26 }
 0x543   :  { %585 = vst [vmem:[#allocation5 + $0x30] sm:$0xff] %v580_v15  ;;  %586 = vst [vmem:[#allocation5 + $0x38] sm:$0xff] %v581_v16 }
 0x544   :  { %826 = shalt.err (!%p823_p12)
}
 0x545   :  { %s827_s21 = scalar_lea.hbm %s1022_s5, 1024 }
 0x546   :  { %p828_p13 = scmp.ne.s32.totalorder %s1022_s5, %s827_s21  ;;  %p831_p0 = scmp.lt.u32.totalorder %s827_s21, %s1022_s5 }
 0x548   :  { %p833_p1 = pnand %p831_p0, %p828_p13 }
 0x54a   :  { %836 = shalt.err (!%p833_p1)
}
 0x54b   :  { %598 = dma.vmem_to_hbm [thread:$0]  %s593_s17, 1024, %s1022_s5, [#allocation4], %s842_s28, %s842_s28, %s843_s29  }
 0x54c   :  { %839 = dma.done.wait [#allocation4], 1024  }
 0x54d   :  { %840 = vsyncadd [#allocation4], 4294966272 }
 0x54e   :  { %602 = vsyncpa [#allocation3], 1 }
 0x54f   :  { %603 = vsyncpa [#allocation4], 1 }

</bundles_post_ra>
